<compile_context>
chip_gen: v7x
topology: tpu7x:2x2x1
jax: 0.10.0
libtpu: 0.0.40
codegen_flags: <defaults>
</compile_context>

<pallas_src>
import math
import functools

import jax
import jax.numpy as jnp
from jax.experimental import pallas as pl
from jax.experimental.pallas import tpu as pltpu


def _make_pe(max_len: int, d_model: int) -> jnp.ndarray:
    """Deterministic sinusoidal table, shape (max_len, 1, d_model)."""
    position = jnp.arange(0, max_len, dtype=jnp.float32)[:, None]          # (L, 1)
    div_term = jnp.exp(
        jnp.arange(0, d_model, 2, dtype=jnp.float32) * (-math.log(10000.0) / d_model)
    )                                                                      # (ceil(D/2),)
    angles = position * div_term                                           # (L, ceil(D/2))
    pe = jnp.zeros((max_len, d_model), dtype=jnp.float32)
    pe = pe.at[:, 0::2].set(jnp.sin(angles))
    # Slice cos so odd d_model also works (the PyTorch original would error there).
    pe = pe.at[:, 1::2].set(jnp.cos(angles)[:, : d_model // 2])
    return pe[:, None, :]                                                  # (L, 1, D)


def _pos_enc_kernel(*refs, batch: int, d_model: int, p: float,
                    training: bool, hw_prng: bool):
    """refs = (seed, x, pe[, scale], out); all 2-D lane-dense chunks."""
    use_dropout = training and p > 0.0
    if use_dropout and not hw_prng:
        seed_ref, x_ref, pe_ref, scale_ref, o_ref = refs
    else:
        seed_ref, x_ref, pe_ref, o_ref = refs
        scale_ref = None

    pe_rows = pe_ref[...]                                     # (ts, D), x.dtype

    if use_dropout and hw_prng:
        # Decorrelate chunks: mix program_id with a large odd constant before
        # adding the externally supplied seed.
        pltpu.prng_seed(seed_ref[0] + pl.program_id(0) * jnp.int32(843314861))
        inv_keep = (1.0 / (1.0 - p)) if p < 1.0 else 0.0       # p==1 -> all zeros
        threshold = jnp.uint32(min(int(p * float(1 << 32)), (1 << 32) - 1))

    # Static per-batch loop over D-wide lane slices of the lane-dense view.
    # No (ts, B*D) pe tile is ever materialized; slices are zero-cost Ref-views
    # (best perf when D % 128 == 0 -> unmasked full-width vector stores).
    for b in range(batch):
        sl = slice(b * d_model, (b + 1) * d_model)
        y = x_ref[:, sl] + pe_rows
        if use_dropout:
            if hw_prng:
                # Bits drawn per slice keeps the dropout working set small.
                bits = pltpu.prng_random_bits(y.shape)
                if bits.dtype != jnp.uint32:
                    bits = pltpu.bitcast(bits, jnp.uint32)
                keep = bits >= threshold                       # P(keep) = 1 - p
                y = jnp.where(keep, y * inv_keep, jnp.zeros_like(y))
            else:
                y = y * scale_ref[:, sl]                       # precomputed 0 or 1/(1-p)
        o_ref[:, sl] = y.astype(o_ref.dtype)


def _vmem_capacity_bytes() -> int:
    """Per-core VMEM capacity; falls back to 128 MiB (v5e/v6e) off-TPU."""
    try:
        if jax.devices()[0].platform == "tpu":
            return int(pltpu.get_tpu_info().vmem_capacity_bytes)
    except Exception:
        pass
    return 128 * 1024 * 1024


def positional_encoding(x: jnp.ndarray,
                        pe: jnp.ndarray,
                        *,
                        p: float = 0.1,
                        training: bool = False,
                        seed: int = 0,
                        tile_rows: int | None = None,
                        vmem_limit_bytes: int | None = None,
                        use_hw_prng: bool | None = None,
                        alias_x_to_out: bool = False) -> jnp.ndarray:
    """x: (S, B, D); pe: (max_len, 1, D). Returns dropout(x + pe[:S])."""
    S, B, D = x.shape
    assert pe.shape[0] >= S and pe.shape[-1] == D

    if use_hw_prng is None:
        # The TPU hardware PRNG has no lowering on non-TPU backends.
        use_hw_prng = jax.default_backend() == "tpu"
    use_dropout = training and p > 0.0

    x2d = x.reshape(S, B * D)                       # lane-dense view: last dim = B*D
    pe2d = pe[:S, 0, :].astype(x.dtype)             # (S, D) in x.dtype (halves pe DMA for bf16)
    seed_arr = jnp.asarray([seed], dtype=jnp.int32)

    # --- generation-aware tiling ---------------------------------------------
    vmem_cap = _vmem_capacity_bytes()
    small_vmem = vmem_cap <= 64 * 1024 * 1024       # v7x: 64 MiB / TensorCore, 2 TCs
    itemsize = x.dtype.itemsize
    row_bytes = B * D * itemsize
    if tile_rows is None:
        if small_vmem:
            per_buf = (3 if use_dropout else 4) * 1024 * 1024
        else:
            per_buf = 8 * 1024 * 1024               # v5e/v6e: 128 MiB VMEM, keep big tiles
        tile_rows = max(1, per_buf // row_bytes)

    ts = min(S, int(tile_rows))
    if small_vmem:
        ts = min(ts, pl.cdiv(S, 2))                 # >=2 chunks so both v7x TCs get work
    align = {4: 8, 2: 16, 1: 32}.get(itemsize, 8)   # sublane packing per dtype width
    if ts < S:
        ts = max(align, (ts // align) * align)
    ts = min(ts, S)
    num_chunks = pl.cdiv(S, ts)

    if vmem_limit_bytes is None:
        vmem_limit_bytes = (40 if small_vmem else 64) * 1024 * 1024

    # --- inputs & specs --------------------------------------------------------
    inputs = [seed_arr, x2d, pe2d]
    in_specs = [
        pl.BlockSpec((ts, B * D), lambda s, seed: (s, 0)),   # x chunk
        pl.BlockSpec((ts, D), lambda s, seed: (s, 0)),       # pe chunk (broadcast in-kernel)
    ]
    if use_dropout and not use_hw_prng:
        # Portable dropout path: precompute the inverted-dropout scale and
        # stream it through the kernel exactly like x.
        if p >= 1.0:
            scale2d = jnp.zeros((S, B * D), dtype=x.dtype)
        else:
            keep = jax.random.bernoulli(jax.random.PRNGKey(seed), 1.0 - p, (S, B * D))
            scale2d = keep.astype(jnp.float32) * (1.0 / (1.0 - p))
            scale2d = scale2d.astype(x.dtype)
        inputs.append(scale2d)
        in_specs.append(pl.BlockSpec((ts, B * D), lambda s, seed: (s, 0)))

    kernel = functools.partial(_pos_enc_kernel, batch=B, d_model=D, p=p,
                               training=training, hw_prng=use_hw_prng)

    out2d = pl.pallas_call(
        kernel,
        out_shape=jax.ShapeDtypeStruct((S, B * D), x.dtype),
        grid_spec=pltpu.PrefetchScalarGridSpec(
            num_scalar_prefetch=1,                   # seed -> SMEM
            grid=(num_chunks,),
            in_specs=in_specs,
            out_specs=pl.BlockSpec((ts, B * D), lambda s, seed: (s, 0)),
        ),
        compiler_params=pltpu.CompilerParams(
            dimension_semantics=("parallel",),       # v7x: 2 TCs split the chunks
            vmem_limit_bytes=vmem_limit_bytes,
        ),
        # x is positional input 1 (after the prefetched seed); only useful if
        # the caller donates x at the jit boundary.
        input_output_aliases=({1: 0} if alias_x_to_out else {}),
    )(*inputs)
    return out2d.reshape(S, B, D)


if __name__ == "__main__":
    d_model = 32
    max_len = 64
    seq_len = 8
    batch = 2

    key = jax.random.PRNGKey(0)
    x = jax.random.normal(key, (seq_len, batch, d_model), dtype=jnp.float32)
    pe = _make_pe(max_len, d_model)
    ref = x + pe[:seq_len]

    # Eval mode: dropout is identity (matches module.eval()).
    out = positional_encoding(x, pe, p=0.1, training=False)
    out = jax.block_until_ready(out)
    assert out.shape == (seq_len, batch, d_model)
    assert jnp.allclose(out, ref, atol=1e-6), "eval-mode mismatch vs reference"

    # Training mode: inverted dropout (hardware PRNG on TPU, precomputed mask
    # elsewhere); loose sanity checks on mask + scaling.
    out_tr = positional_encoding(x, pe, p=0.5, training=True, seed=1234)
    out_tr = jax.block_until_ready(out_tr)
    n_zero = int(jnp.sum(out_tr == 0.0))
    assert 0 < n_zero < out_tr.size, "dropout mask looks degenerate"
    kept = out_tr != 0.0
    assert jnp.allclose(jnp.where(kept, out_tr, 0.0),
                        jnp.where(kept, ref * 2.0, 0.0), atol=1e-5), \
        "kept elements not scaled by 1/(1-p)"
    # TODO(synk): dropout mask is drawn from the TPU hardware PRNG (or
    # jax.random off-TPU), so it is distributionally equivalent but not
    # bit-identical to torch.nn.Dropout's RNG stream.

    print("KERNEL_OK")
</pallas_src>

<mosaic_0001>
module attributes {stable_mosaic.version = 11 : i64} {
  func.func @_pos_enc_kernel(%arg0: i32, %arg1: memref<1xi32, #tpu.memory_space<smem>>, %arg2: memref<8x64xf32, #tpu.memory_space<vmem>>, %arg3: memref<8x32xf32, #tpu.memory_space<vmem>>, %arg4: memref<8x64xf32, #tpu.memory_space<vmem>>) attributes {dimension_semantics = [#tpu.dimension_semantics<parallel>], iteration_bounds = array<i64: 1>, scalar_prefetch = 1 : i64, scratch_operands = 0 : i64, tpu.core_type = #tpu.core_type<tc>, window_params = [{transform_indices = @transform_0, window_bounds = array<i64: 8, 64>}, {transform_indices = @transform_1, window_bounds = array<i64: 8, 32>}, {transform_indices = @transform_2, window_bounds = array<i64: 8, 64>}]} {
    %c0 = arith.constant 0 : index
    %c0_0 = arith.constant 0 : index
    %0 = vector.load %arg3[%c0, %c0_0] : memref<8x32xf32, #tpu.memory_space<vmem>>, vector<8x32xf32>
    %c0_1 = arith.constant 0 : index
    %c0_2 = arith.constant 0 : index
    %1 = vector.load %arg2[%c0_1, %c0_2] : memref<8x64xf32, #tpu.memory_space<vmem>>, vector<8x32xf32>
    %2 = arith.addf %1, %0 : vector<8x32xf32>
    %c0_3 = arith.constant 0 : index
    %c0_4 = arith.constant 0 : index
    %3 = vector.load %arg4[%c0_3, %c0_4] : memref<8x64xf32, #tpu.memory_space<vmem>>, vector<8x32xf32>
    tpu.vector_store %arg4[%c0_3, %c0_4], %2 {strides = array<i32>} : memref<8x64xf32, #tpu.memory_space<vmem>>, vector<8x32xf32>,
    %c0_5 = arith.constant 0 : index
    %c32 = arith.constant 32 : index
    %4 = vector.load %arg2[%c0_5, %c32] : memref<8x64xf32, #tpu.memory_space<vmem>>, vector<8x32xf32>
    %5 = arith.addf %4, %0 : vector<8x32xf32>
    %c0_6 = arith.constant 0 : index
    %c32_7 = arith.constant 32 : index
    %6 = vector.load %arg4[%c0_6, %c32_7] : memref<8x64xf32, #tpu.memory_space<vmem>>, vector<8x32xf32>
    tpu.vector_store %arg4[%c0_6, %c32_7], %5 {strides = array<i32>} : memref<8x64xf32, #tpu.memory_space<vmem>>, vector<8x32xf32>,
    return
  }
  func.func @transform_0(%arg0: i32, %arg1: memref<1xi32, #tpu.memory_space<smem>>) -> (i32, i32) {
    %c0_i32 = arith.constant 0 : i32
    %c0_i32_0 = arith.constant 0 : i32
    return %arg0, %c0_i32 : i32, i32
  }
  func.func @transform_1(%arg0: i32, %arg1: memref<1xi32, #tpu.memory_space<smem>>) -> (i32, i32) {
    %c0_i32 = arith.constant 0 : i32
    %c0_i32_0 = arith.constant 0 : i32
    return %arg0, %c0_i32 : i32, i32
  }
  func.func @transform_2(%arg0: i32, %arg1: memref<1xi32, #tpu.memory_space<smem>>) -> (i32, i32) {
    %c0_i32 = arith.constant 0 : i32
    %c0_i32_0 = arith.constant 0 : i32
    return %arg0, %c0_i32 : i32, i32
  }
}

</mosaic_0001>

<bundles_post_ra>
// kernel: tpu_custom_call.1
= control target key start
LH: loop header
LB: loop body
LE: loop exit
PB: predicated region body
PF: predicated region fallthrough
CT: control target
= control target key end

     0   :  { %9 = vsyncpa [#allocation5], 0  ;;  %s203_s0 = inlined_call_operand.<no memory space> [shape: s32[1], index: 0, kind: input, shape index: {}]   ;;  %s204_s1 = inlined_call_operand.hbm [shape: f32[8,64], index: 1, kind: input, shape index: {}]   ;;  %s205_s2 = inlined_call_operand.hbm [shape: f32[8,32], index: 2, kind: input, shape index: {}]   ;;  %s206_s3 = inlined_call_operand.hbm [shape: f32[8,64], index: 3, kind: output, shape index: {}]  }
   0x1   :  { %10 = vsyncpa [#allocation8], 0 }
   0x2   :  { %11 = vsyncpa [#allocation6], 0  ;;  %s143_s12 = smov [#allocation4]   ;;  %s144_s14 = smov [#allocation7]  }
   0x3   :  { %s18_s13 = sshll.u32 %s143_s12, 4  ;;  %s28_s15 = sshll.u32 %s144_s14, 4  ;;  %s19_s13 = int_to_ptr.vmem [resolvable:$true] %s18_s13  ;;  %s29_s15 = int_to_ptr.vmem [resolvable:$true] %s28_s15 }
   0x4   :  { %s71_s17 = scalar_lea.hbm %s204_s1, 128 }
   0x5   :  { %p72_p0 = scmp.ne.s32.totalorder %s204_s1, %s71_s17  ;;  %p75_p1 = scmp.lt.u32.totalorder %s71_s17, %s204_s1 }
   0x7   :  { %p77_p2 = pnand %p75_p1, %p72_p0 }
   0x9   :  { %80 = shalt.err (!%p77_p2)
}
   0xa   :  { %s81_s22 = scalar_lea.vmem %s19_s13, 128  ;;  %p86_p4 = scmp.lt.s32.totalorder %s19_s13, %s19_s13 }
   0xb   :  { %p82_p3 = scmp.ne.s32.totalorder %s19_s13, %s81_s22  ;;  %p87_p5 = scmp.lt.s32.totalorder %s81_s22, %s81_s22 }
   0xd   :  { %p88_p6 = por %p87_p5, %p86_p4 }
   0xf   :  { %p89_p7 = pnand %p88_p6, %p82_p3 }
  0x11   :  { %92 = shalt.err (!%p89_p7)
}
  0x12   :  { %21 = dma.hbm_to_vmem [thread:$0]  %s204_s1, 128, %s19_s13, [#allocation5]  }
  0x13   :  { %s93_s27 = scalar_lea.hbm %s205_s2, 128 }
  0x14   :  { %p94_p8 = scmp.ne.s32.totalorder %s205_s2, %s93_s27  ;;  %p97_p9 = scmp.lt.u32.totalorder %s93_s27, %s205_s2 }
  0x16   :  { %p99_p10 = pnand %p97_p9, %p94_p8 }
  0x18   :  { %102 = shalt.err (!%p99_p10)
}
  0x19   :  { %s103_s5 = scalar_lea.vmem %s29_s15, 128  ;;  %p108_p12 = scmp.lt.s32.totalorder %s29_s15, %s29_s15 }
  0x1a   :  { %p104_p11 = scmp.ne.s32.totalorder %s29_s15, %s103_s5  ;;  %p109_p13 = scmp.lt.s32.totalorder %s103_s5, %s103_s5 }
  0x1c   :  { %p110_p0 = por %p109_p13, %p108_p12 }
  0x1e   :  { %p111_p1 = pnand %p110_p0, %p104_p11 }
  0x20   :  { %114 = shalt.err (!%p111_p1)
}
  0x21   :  { %31 = dma.hbm_to_vmem [thread:$0]  %s205_s2, 128, %s29_s15, [#allocation8]  }
  0x22   :  { %137 = dma.done.wait [#allocation5], 128  }
  0x23   :  { %138 = vsyncadd [#allocation5], 4294967168 }
  0x24   :  { %139 = dma.done.wait [#allocation8], 128  }
  0x25   :  { %140 = vsyncadd [#allocation8], 4294967168  ;;  %v38_v0 = vld [vmem:[#allocation7] sm:$0xff]  ;;  %v39_v1 = vld [vmem:[#allocation4] sm:$0xff]  ;;  %vm41_vm0 = vcmask 261120   ;;  %s145_s7 = smov 32  }
  0x26   :  { %v40_v2 = vadd.f32 %v39_v1, %v38_v0  ;;  %45 = vrot.lane.b32.xlu0 %v38_v0, %s145_s7  ;;  %s146_s8 = smov [#allocation9]   ;;  %vm49_vm1 = vcmask 523520  }
  0x27   :  { %s57_s9 = sshll.u32 %s146_s8, 4  ;;  %s58_s9 = int_to_ptr.vmem [resolvable:$true] %s57_s9 }
  0x28   :  { %42 = vst.msk [vmem:[#allocation9] sm:$0xff] %vm41_vm0, %v40_v2  ;;  %s115_s10 = scalar_lea.vmem %s58_s9, 128  ;;  %p120_p3 = scmp.lt.s32.totalorder %s58_s9, %s58_s9 }
  0x29   :  { %p116_p2 = scmp.ne.s32.totalorder %s58_s9, %s115_s10  ;;  %p121_p4 = scmp.lt.s32.totalorder %s115_s10, %s115_s10 }
  0x2b   :  { %p122_p5 = por %p121_p4, %p120_p3 }
  0x2d   :  { %p123_p6 = pnand %p122_p5, %p116_p2 }
  0x98   :  { %v46_v3 = vpop.permute.xlu0 %45 }
  0x99   :  { %v48_v4 = vadd.f32 %v46_v3, %v39_v1 }
  0x9b   :  { %50 = vst.msk [vmem:[#allocation9] sm:$0xff] %vm49_vm1, %v48_v4 }
  0x9c   :  { %126 = shalt.err (!%p123_p6)
}
  0x9d   :  { %s127_s12 = scalar_lea.hbm %s206_s3, 128 }
  0x9e   :  { %p128_p7 = scmp.ne.s32.totalorder %s206_s3, %s127_s12  ;;  %p131_p8 = scmp.lt.u32.totalorder %s127_s12, %s206_s3 }
  0xa0   :  { %p133_p9 = pnand %p131_p8, %p128_p7 }
  0xa2   :  { %136 = shalt.err (!%p133_p9)
}
  0xa3   :  { %60 = dma.vmem_to_hbm [thread:$0]  %s58_s9, 128, %s206_s3, [#allocation6]  }
  0xa4   :  { %141 = dma.done.wait [#allocation6], 128  }
  0xa5   :  { %142 = vsyncadd [#allocation6], 4294967168 }
  0xa6   :  { %64 = vsyncpa [#allocation5], 1 }
  0xa7   :  { %65 = vsyncpa [#allocation8], 1 }
  0xa8   :  { %66 = vsyncpa [#allocation6], 1 }

</bundles_post_ra>
